<compile_context>
chip_gen: v6e
topology: v6e:2x2x1
jax: 0.10.0
libtpu: 0.0.40
codegen_flags: <defaults>
</compile_context>

<pallas_src>
import functools
import math

import jax
import jax.numpy as jnp
from jax.experimental import pallas as pl
from jax.experimental.pallas import tpu as pltpu


def _round_up(x: int, m: int) -> int:
    return ((x + m - 1) // m) * m


def _cdiv(a: int, b: int) -> int:
    return (a + b - 1) // b


def _vmem_capacity_bytes() -> int:
    """Per-core VMEM capacity; conservative (v7x-sized) fallback if query fails."""
    try:
        cap = int(pltpu.get_tpu_info().vmem_capacity_bytes)
        if cap >= (32 << 20):
            return cap
    except Exception:
        pass
    return 64 << 20


def _logreg_kernel(x_ref, w_ref, b_ref, o_ref, *, apply_sigmoid: bool):
    # x_ref: (tb, ft_in) input dtype; w_ref: (ft_in, tn) bf16; b_ref: (1, tn) f32
    x = x_ref[...].astype(w_ref.dtype)          # in-kernel cast (VPU slot, free)
    acc = jnp.dot(x, w_ref[...], preferred_element_type=jnp.float32)  # MXU, f32 acc
    acc = acc + b_ref[...]                      # f32 epilogue (broadcast over rows)
    if apply_sigmoid:
        acc = jax.nn.sigmoid(acc)               # EUP
    o_ref[...] = acc.astype(o_ref.dtype)


def prepare_logreg_params(weight, bias, weight_dtype=jnp.bfloat16):
    """One-time parameter prep: transpose / cast / lane-dense class padding.

    weight : [nb_classes, ft_in] (PyTorch nn.Linear layout)
    bias   : [nb_classes]
    """
    nb_classes, _ = weight.shape
    n_pad = _round_up(max(nb_classes, 1), 128)
    w_t = weight.T.astype(weight_dtype)                      # [ft_in, nb_classes]
    b2 = bias.astype(jnp.float32).reshape(1, nb_classes)
    if n_pad != nb_classes:
        w_t = jnp.pad(w_t, ((0, 0), (0, n_pad - nb_classes)))
        b2 = jnp.pad(b2, ((0, 0), (0, n_pad - nb_classes)))
    return w_t, b2, nb_classes


def _pick_tiles(B, ft_in, n_pad, dsz_x, dsz_out, sub, budget):
    # Class tile: lane-dense multiple of 128, bounded so the (double-buffered)
    # weight + bias blocks stay under ~half the VMEM budget.
    tn = n_pad
    while tn > 128 and 2 * (ft_in * tn * 2 + tn * 4) > budget // 2:
        tn = _round_up(tn // 2, 128)
    w_bytes = 2 * (ft_in * tn * 2 + tn * 4)

    # Batch tile: target a multi-MiB x+out block per grid step (amortize the
    # per-step pipeline overhead), bounded by the remaining VMEM budget.
    per_row = ft_in * dsz_x + tn * dsz_out
    remaining = max(budget - w_bytes, 2 << 20)
    tb = min((4 << 20) // per_row,              # ~4 MiB block -> ~8 MiB double-buffered
             remaining // (2 * per_row))
    if B <= sub:
        tb = B                                  # single full-batch block
    else:
        tb = max(sub, (tb // sub) * sub)
        if B > 2 * sub:                         # keep >=2 batch tiles (v7x megacore)
            tb = min(tb, _round_up(_cdiv(B, 2), sub))
        tb = min(tb, _round_up(B, sub))
    return tb, tn


def logreg_apply(x, w_t, b2, nb_classes, flag=None):
    """Pallas LogReg forward with pre-prepared params (see prepare_logreg_params)."""
    B, ft_in = x.shape
    ft_in_w, n_pad = w_t.shape
    assert ft_in == ft_in_w and n_pad % 128 == 0 and n_pad >= nb_classes

    out_dtype = x.dtype
    dsz_x = jnp.dtype(x.dtype).itemsize
    dsz_out = jnp.dtype(out_dtype).itemsize
    sub = max(8, 32 // dsz_x)                   # sublane multiple for the batch tile

    vmem_cap = _vmem_capacity_bytes()
    budget = int(vmem_cap * 0.7)                # ~45 MiB on v7x, ~90 MiB on v5e/v6e
    tb, tn = _pick_tiles(B, ft_in, n_pad, dsz_x, dsz_out, sub, budget)
    b_grid = _cdiv(B, tb)
    n_grid = _cdiv(n_pad, tn)
    # TODO(synk): for ft_in so large that a single (ft_in x 128) bf16 weight block
    # exceeds VMEM, add a K grid axis with an f32 VMEM accumulator + pl.when
    # init/finalize instead of a resident weight block.

    vmem_est = (2 * tb * ft_in * dsz_x          # x double buffer
                + 2 * (ft_in * tn * 2 + tn * 4)  # weight + bias (worst case 2 bufs)
                + 2 * tb * tn * dsz_out)        # out double buffer
    vmem_limit = max(32 << 20, min(vmem_est + (8 << 20), int(vmem_cap * 0.9)))

    kernel = functools.partial(_logreg_kernel, apply_sigmoid=(flag == "multi"))

    def run(single_buffer_invariants):
        def inv_spec(shape, imap):
            # Grid-invariant operands only need one VMEM buffer.
            if single_buffer_invariants and hasattr(pl, "Buffered"):
                return pl.BlockSpec(shape, imap, pipeline_mode=pl.Buffered(1))
            return pl.BlockSpec(shape, imap)

        grid_spec = pltpu.PrefetchScalarGridSpec(
            num_scalar_prefetch=0,
            grid=(b_grid, n_grid),              # batch outer, classes inner
            in_specs=[
                pl.BlockSpec((tb, ft_in), lambda i, j: (i, 0)),
                inv_spec((ft_in, tn), lambda i, j: (0, j)),
                inv_spec((1, tn), lambda i, j: (0, j)),
            ],
            out_specs=pl.BlockSpec((tb, tn), lambda i, j: (i, j)),
        )
        return pl.pallas_call(
            kernel,
            out_shape=jax.ShapeDtypeStruct((B, n_pad), out_dtype),  # no batch pad
            grid_spec=grid_spec,
            compiler_params=pltpu.CompilerParams(
                dimension_semantics=("parallel", "parallel"),
                vmem_limit_bytes=vmem_limit,
            ),
        )(x, w_t, b2)

    single = (n_grid == 1)  # weight/bias blocks are grid-invariant only then
    try:
        out_padded = run(single)
    except Exception:
        if not single:
            raise
        out_padded = run(False)  # fallback if pipeline_mode=Buffered(1) unsupported

    if n_pad == nb_classes:
        return out_padded
    return out_padded[:, :nb_classes]


def logreg_forward(x, weight, bias, flag=None):
    """Convenience wrapper: prep params + apply (prefer hoisting prep out of loops)."""
    w_t, b2, nb_classes = prepare_logreg_params(weight, bias)
    return logreg_apply(x, w_t, b2, nb_classes, flag=flag)


def xavier_uniform(key, fan_out, fan_in, dtype=jnp.float32):
    # Matches torch.nn.init.xavier_uniform_ for a Linear weight [fan_out, fan_in].
    bound = math.sqrt(6.0 / (fan_in + fan_out))
    return jax.random.uniform(
        key, (fan_out, fan_in), dtype=dtype, minval=-bound, maxval=bound
    )


if __name__ == "__main__":
    key = jax.random.PRNGKey(0)
    k_x, k_w, k_x2 = jax.random.split(key, 3)

    B, ft_in, nb_classes = 8, 32, 16
    x = jax.random.normal(k_x, (B, ft_in), dtype=jnp.float32)

    # Deterministic parameter init mirroring LogReg.__init__
    w = xavier_uniform(k_w, nb_classes, ft_in)        # PyTorch layout [out, in]
    b = jnp.zeros((nb_classes,), dtype=jnp.float32)   # bias filled with 0.0

    # Hoisted (one-time) parameter prep.
    w_t, b2, nc = prepare_logreg_params(w, b)

    out_plain = jax.block_until_ready(logreg_apply(x, w_t, b2, nc, flag=None))
    out_multi = jax.block_until_ready(logreg_apply(x, w_t, b2, nc, flag="multi"))
    assert out_plain.shape == (B, nb_classes)
    assert out_multi.shape == (B, nb_classes)

    # Reference (bf16 weights/inputs as in the kernel compute path, f32 accumulate).
    xb = x.astype(jnp.bfloat16).astype(jnp.float32)
    wb = w.astype(jnp.bfloat16).astype(jnp.float32)
    ref_plain = xb @ wb.T + b[None, :]
    ref_multi = jax.nn.sigmoid(ref_plain)
    assert jnp.allclose(out_plain, ref_plain, atol=2e-2, rtol=2e-2)
    assert jnp.allclose(out_multi, ref_multi, atol=2e-2, rtol=2e-2)

    # Exercise the cdiv grid / partial last batch block (B not a tile multiple).
    B2 = 19
    x2 = jax.random.normal(k_x2, (B2, ft_in), dtype=jnp.float32)
    out2 = jax.block_until_ready(logreg_forward(x2, w, b, flag="multi"))
    ref2 = jax.nn.sigmoid(
        x2.astype(jnp.bfloat16).astype(jnp.float32) @ wb.T + b[None, :])
    assert out2.shape == (B2, nb_classes)
    assert jnp.allclose(out2, ref2, atol=2e-2, rtol=2e-2)

    print("KERNEL_OK")
</pallas_src>

<mosaic_0001>
module attributes {stable_mosaic.version = 11 : i64} {
  func.func @_logreg_kernel(%arg0: i32, %arg1: i32, %arg2: memref<8x32xf32, #tpu.memory_space<vmem>>, %arg3: memref<32x128xbf16, #tpu.memory_space<vmem>>, %arg4: memref<1x128xf32, #tpu.memory_space<vmem>>, %arg5: memref<8x128xf32, #tpu.memory_space<vmem>>) attributes {dimension_semantics = [#tpu.dimension_semantics<parallel>, #tpu.dimension_semantics<parallel>], iteration_bounds = array<i64: 1, 1>, scalar_prefetch = 0 : i64, scratch_operands = 0 : i64, tpu.core_type = #tpu.core_type<tc>, window_params = [{transform_indices = @transform_0, window_bounds = array<i64: 8, 32>}, {pipeline_mode = #tpu.pipeline_mode<synchronous>, transform_indices = @transform_1, window_bounds = array<i64: 32, 128>}, {pipeline_mode = #tpu.pipeline_mode<synchronous>, transform_indices = @transform_2, window_bounds = array<i64: 1, 128>}, {transform_indices = @transform_3, window_bounds = array<i64: 8, 128>}]} {
    %c0 = arith.constant 0 : index
    %c0_0 = arith.constant 0 : index
    %0 = vector.load %arg2[%c0, %c0_0] : memref<8x32xf32, #tpu.memory_space<vmem>>, vector<8x32xf32>
    %1 = arith.truncf %0 : vector<8x32xf32> to vector<8x32xbf16>
    %c0_1 = arith.constant 0 : index
    %c0_2 = arith.constant 0 : index
    %2 = vector.load %arg3[%c0_1, %c0_2] : memref<32x128xbf16, #tpu.memory_space<vmem>>, vector<32x128xbf16>
    %cst = arith.constant dense<0.000000e+00> : vector<8x128xf32>
    %3 = tpu.matmul %1, %2, %cst {dimension_numbers = #tpu.dot_dimension_numbers<[1], [0], [0], [1], [0, 0, 1, 1], [], []>} : vector<8x32xbf16>, vector<32x128xbf16>, vector<8x128xf32> -> vector<8x128xf32>
    %c0_3 = arith.constant 0 : index
    %c0_4 = arith.constant 0 : index
    %4 = vector.load %arg4[%c0_3, %c0_4] : memref<1x128xf32, #tpu.memory_space<vmem>>, vector<1x128xf32>
    %5 = vector.broadcast %4 : vector<1x128xf32> to vector<8x128xf32>
    %6 = arith.addf %3, %5 : vector<8x128xf32>
    %c0_5 = arith.constant 0 : index
    %c0_6 = arith.constant 0 : index
    %7 = vector.load %arg5[%c0_5, %c0_6] : memref<8x128xf32, #tpu.memory_space<vmem>>, vector<8x128xf32>
    tpu.vector_store %arg5[%c0_5, %c0_6], %6 {strides = array<i32>} : memref<8x128xf32, #tpu.memory_space<vmem>>, vector<8x128xf32>,
    return
  }
  func.func @transform_0(%arg0: i32, %arg1: i32) -> (i32, i32) {
    %c0_i32 = arith.constant 0 : i32
    %c0_i32_0 = arith.constant 0 : i32
    return %arg0, %c0_i32 : i32, i32
  }
  func.func @transform_1(%arg0: i32, %arg1: i32) -> (i32, i32) {
    %c0_i32 = arith.constant 0 : i32
    %c0_i32_0 = arith.constant 0 : i32
    return %c0_i32, %arg1 : i32, i32
  }
  func.func @transform_2(%arg0: i32, %arg1: i32) -> (i32, i32) {
    %c0_i32 = arith.constant 0 : i32
    %c0_i32_0 = arith.constant 0 : i32
    return %c0_i32, %arg1 : i32, i32
  }
  func.func @transform_3(%arg0: i32, %arg1: i32) -> (i32, i32) {
    %c0_i32 = arith.constant 0 : i32
    return %arg0, %arg1 : i32, i32
  }
}

module attributes {stable_mosaic.version = 11 : i64} {
  func.func @_logreg_kernel(%arg0: i32, %arg1: i32, %arg2: memref<8x32xf32, #tpu.memory_space<vmem>>, %arg3: memref<32x128xbf16, #tpu.memory_space<vmem>>, %arg4: memref<1x128xf32, #tpu.memory_space<vmem>>, %arg5: memref<8x128xf32, #tpu.memory_space<vmem>>) attributes {dimension_semantics = [#tpu.dimension_semantics<parallel>, #tpu.dimension_semantics<parallel>], iteration_bounds = array<i64: 1, 1>, scalar_prefetch = 0 : i64, scratch_operands = 0 : i64, tpu.core_type = #tpu.core_type<tc>, window_params = [{transform_indices = @transform_0, window_bounds = array<i64: 8, 32>}, {transform_indices = @transform_1, window_bounds = array<i64: 32, 128>}, {transform_indices = @transform_2, window_bounds = array<i64: 1, 128>}, {transform_indices = @transform_3, window_bounds = array<i64: 8, 128>}]} {
    %c0 = arith.constant 0 : index
    %c0_0 = arith.constant 0 : index
    %0 = vector.load %arg2[%c0, %c0_0] : memref<8x32xf32, #tpu.memory_space<vmem>>, vector<8x32xf32>
    %1 = arith.truncf %0 : vector<8x32xf32> to vector<8x32xbf16>
    %c0_1 = arith.constant 0 : index
    %c0_2 = arith.constant 0 : index
    %2 = vector.load %arg3[%c0_1, %c0_2] : memref<32x128xbf16, #tpu.memory_space<vmem>>, vector<32x128xbf16>
    %cst = arith.constant dense<0.000000e+00> : vector<8x128xf32>
    %3 = tpu.matmul %1, %2, %cst {dimension_numbers = #tpu.dot_dimension_numbers<[1], [0], [0], [1], [0, 0, 1, 1], [], []>} : vector<8x32xbf16>, vector<32x128xbf16>, vector<8x128xf32> -> vector<8x128xf32>
    %c0_3 = arith.constant 0 : index
    %c0_4 = arith.constant 0 : index
    %4 = vector.load %arg4[%c0_3, %c0_4] : memref<1x128xf32, #tpu.memory_space<vmem>>, vector<1x128xf32>
    %5 = vector.broadcast %4 : vector<1x128xf32> to vector<8x128xf32>
    %6 = arith.addf %3, %5 : vector<8x128xf32>
    %c0_5 = arith.constant 0 : index
    %c0_6 = arith.constant 0 : index
    %7 = vector.load %arg5[%c0_5, %c0_6] : memref<8x128xf32, #tpu.memory_space<vmem>>, vector<8x128xf32>
    tpu.vector_store %arg5[%c0_5, %c0_6], %6 {strides = array<i32>} : memref<8x128xf32, #tpu.memory_space<vmem>>, vector<8x128xf32>,
    return
  }
  func.func @transform_0(%arg0: i32, %arg1: i32) -> (i32, i32) {
    %c0_i32 = arith.constant 0 : i32
    %c0_i32_0 = arith.constant 0 : i32
    return %arg0, %c0_i32 : i32, i32
  }
  func.func @transform_1(%arg0: i32, %arg1: i32) -> (i32, i32) {
    %c0_i32 = arith.constant 0 : i32
    %c0_i32_0 = arith.constant 0 : i32
    return %c0_i32, %arg1 : i32, i32
  }
  func.func @transform_2(%arg0: i32, %arg1: i32) -> (i32, i32) {
    %c0_i32 = arith.constant 0 : i32
    %c0_i32_0 = arith.constant 0 : i32
    return %c0_i32, %arg1 : i32, i32
  }
  func.func @transform_3(%arg0: i32, %arg1: i32) -> (i32, i32) {
    %c0_i32 = arith.constant 0 : i32
    return %arg0, %arg1 : i32, i32
  }
}

</mosaic_0001>

<bundles_post_ra>
// kernel: tpu_custom_call.1
= control target key start
LH: loop header
LB: loop body
LE: loop exit
PB: predicated region body
PF: predicated region fallthrough
CT: control target
= control target key end

     0   :  { %8 = vsyncpa [#allocation3], 0  ;;  %s257_s0 = inlined_call_operand.hbm [shape: f32[8,32], index: 0, kind: input, shape index: {}]   ;;  %s258_s1 = inlined_call_operand.hbm [shape: bf16[32,128], index: 1, kind: input, shape index: {}]   ;;  %s259_s2 = inlined_call_operand.vmem [shape: f32[1,128], index: 2, kind: input, shape index: {}]   ;;  %s260_s3 = inlined_call_operand.hbm [shape: f32[8,128], index: 3, kind: output, shape index: {}]  }
   0x1   :  { %9 = vsyncpa [#allocation6], 0 }
   0x2   :  { %10 = vsyncpa [#allocation4], 0  ;;  %s218_s12 = smov [#allocation2]   ;;  %s219_s14 = smov [#allocation5]  }
   0x3   :  { %s17_s13 = sshll.u32 %s218_s12, 4  ;;  %s26_s15 = sshll.u32 %s219_s14, 4  ;;  %s18_s13 = int_to_ptr.vmem [resolvable:$true] %s17_s13  ;;  %s27_s15 = int_to_ptr.vmem [resolvable:$true] %s26_s15 }
   0x4   :  { %s160_s16 = scalar_lea.vmem %s18_s13, 128  ;;  %p165_p1 = scmp.lt.s32.totalorder %s18_s13, %s18_s13 }
   0x5   :  { %p161_p0 = scmp.ne.s32.totalorder %s18_s13, %s160_s16  ;;  %p166_p2 = scmp.lt.s32.totalorder %s160_s16, %s160_s16 }
   0x7   :  { %p167_p3 = por %p166_p2, %p165_p1 }
   0x9   :  { %p168_p4 = pnand %p167_p3, %p161_p0 }
   0xb   :  { %171 = shalt.err (!%p168_p4)
}
   0xc   :  { %20 = dma.hbm_to_vmem [thread:$0]  %s257_s0, 128, %s18_s13, [#allocation3]  }
   0xd   :  { %s180_s19 = scalar_lea.vmem %s27_s15, 256  ;;  %p185_p6 = scmp.lt.s32.totalorder %s27_s15, %s27_s15 }
   0xe   :  { %p181_p5 = scmp.ne.s32.totalorder %s27_s15, %s180_s19  ;;  %p186_p7 = scmp.lt.s32.totalorder %s180_s19, %s180_s19 }
  0x10   :  { %p187_p8 = por %p186_p7, %p185_p6 }
  0x12   :  { %p188_p9 = pnand %p187_p8, %p181_p5 }
  0x14   :  { %191 = shalt.err (!%p188_p9)
}
  0x15   :  { %s220_s20 = smov 64   ;;  %s221_s21 = smov 4  }
  0x16   :  { %32 = dma.hbm_to_vmem [thread:$0]  %s258_s1, 256, %s27_s15, [#allocation6], %s220_s20, %s220_s20, %s221_s21  }
  0x17   :  { %212 = dma.done.wait [#allocation3], 128  }
  0x18   :  { %213 = vsyncadd [#allocation3], 4294967168 }
  0x19   :  { %214 = dma.done.wait [#allocation6], 256  }
  0x1a   :  { %215 = vsyncadd [#allocation6], 4294967040  ;;  %v222_v0 = vmov 0.0   ;;  %vm223_vm0 = vmmov 0   ;;  %v150_v1 = vld [vmem:[#allocation5 + $0x8] sm:$0xff]   ;;  %v151_v2 = vld [vmem:[#allocation5] sm:$0xff]  }
  0x1b   :  { %135 = vmatprep.subr.bf16.mxu0 %v222_v0  ;;  %139 = vmatprep.mubr.msk.bf16.mxu0 %vm223_vm0, %v222_v0  ;;  %v42_v3 = vld [vmem:[#allocation2] sm:$0xff]  ;;  %vm67_vm1 = vcmask 261120   ;;  %s224_s1 = smov [#allocation7]  }
  0x1c   :  { %136 = vmatpush3.bf16.msra.mxu0 %v150_v1  ;;  %v43_v4 = vpack.c.bf16 %v42_v3, %v42_v3  ;;  %v128_v5 = vld [vmem:[%s259_s2] ss:$0 sm:$0xff]  ;;  %s118_s25 = sshll.u32 %s224_s1, 4  ;;  %s119_s25 = int_to_ptr.vmem [resolvable:$true] %s118_s25 }
  0x1d   :  { %137 = vmatprep.subr.bf16.mxu0 %v222_v0  ;;  %s192_s26 = scalar_lea.vmem %s119_s25, 128  ;;  %p197_p11 = scmp.lt.s32.totalorder %s119_s25, %s119_s25 }
  0x1e   :  { %p193_p10 = scmp.ne.s32.totalorder %s119_s25, %s192_s26  ;;  %p198_p12 = scmp.lt.s32.totalorder %s192_s26, %s192_s26 }
  0x20   :  { %138 = vmatpush3.bf16.msra.mxu0 %v151_v2  ;;  %p199_p13 = por %p198_p12, %p197_p11 }
  0x22   :  { %p200_p0 = pnand %p199_p13, %p193_p10 }
  0x23   :  { %140 = vmatmul.mubr.msk.bf16.vlgmr.msra.gmra.mxu0 %vm67_vm1, %v43_v4 }
  0xe3   :  { %v105_v6 = vpop.f32.mrf.mxu0 }
  0xe4   :  { %v106_v7 = vadd.f32 %v128_v5, %v105_v6 }
  0xe5   :  { %v141_v8 = vpop.f32.mrf.mxu0 }
  0xe6   :  { %111 = vst [vmem:[#allocation7] sm:$0xff] %v106_v7 }
  0xe7   :  { %v108_v9 = vpop.f32.mrf.mxu0 }
  0xe8   :  { %203 = shalt.err (!%p200_p0)
}
  0xe9   :  { %121 = dma.vmem_to_hbm [thread:$0]  %s119_s25, 128, %s260_s3, [#allocation4]   ;;  %v142_v10 = vpop.f32.mrf.mxu0 }
  0xea   :  { %216 = dma.done.wait [#allocation4], 128  }
  0xeb   :  { %217 = vsyncadd [#allocation4], 4294967168 }
  0xec   :  { %125 = vsyncpa [#allocation3], 1 }
  0xed   :  { %126 = vsyncpa [#allocation6], 1 }
  0xee   :  { %127 = vsyncpa [#allocation4], 1 }

// kernel: tpu_custom_call.1
= control target key start
LH: loop header
LB: loop body
LE: loop exit
PB: predicated region body
PF: predicated region fallthrough
CT: control target
= control target key end

     0   :  { %8 = vsyncpa [#allocation3], 0  ;;  %s257_s0 = inlined_call_operand.hbm [shape: f32[8,32], index: 0, kind: input, shape index: {}]   ;;  %s258_s1 = inlined_call_operand.hbm [shape: bf16[32,128], index: 1, kind: input, shape index: {}]   ;;  %s259_s2 = inlined_call_operand.vmem [shape: f32[1,128], index: 2, kind: input, shape index: {}]   ;;  %s260_s3 = inlined_call_operand.hbm [shape: f32[8,128], index: 3, kind: output, shape index: {}]  }
   0x1   :  { %9 = vsyncpa [#allocation6], 0 }
   0x2   :  { %10 = vsyncpa [#allocation4], 0  ;;  %s218_s12 = smov [#allocation2]   ;;  %s219_s14 = smov [#allocation5]  }
   0x3   :  { %s17_s13 = sshll.u32 %s218_s12, 4  ;;  %s26_s15 = sshll.u32 %s219_s14, 4  ;;  %s18_s13 = int_to_ptr.vmem [resolvable:$true] %s17_s13  ;;  %s27_s15 = int_to_ptr.vmem [resolvable:$true] %s26_s15 }
   0x4   :  { %s160_s16 = scalar_lea.vmem %s18_s13, 128  ;;  %p165_p1 = scmp.lt.s32.totalorder %s18_s13, %s18_s13 }
   0x5   :  { %p161_p0 = scmp.ne.s32.totalorder %s18_s13, %s160_s16  ;;  %p166_p2 = scmp.lt.s32.totalorder %s160_s16, %s160_s16 }
   0x7   :  { %p167_p3 = por %p166_p2, %p165_p1 }
   0x9   :  { %p168_p4 = pnand %p167_p3, %p161_p0 }
   0xb   :  { %171 = shalt.err (!%p168_p4)
}
   0xc   :  { %20 = dma.hbm_to_vmem [thread:$0]  %s257_s0, 128, %s18_s13, [#allocation3]  }
   0xd   :  { %s180_s19 = scalar_lea.vmem %s27_s15, 256  ;;  %p185_p6 = scmp.lt.s32.totalorder %s27_s15, %s27_s15 }
   0xe   :  { %p181_p5 = scmp.ne.s32.totalorder %s27_s15, %s180_s19  ;;  %p186_p7 = scmp.lt.s32.totalorder %s180_s19, %s180_s19 }
  0x10   :  { %p187_p8 = por %p186_p7, %p185_p6 }
  0x12   :  { %p188_p9 = pnand %p187_p8, %p181_p5 }
  0x14   :  { %191 = shalt.err (!%p188_p9)
}
  0x15   :  { %s220_s20 = smov 64   ;;  %s221_s21 = smov 4  }
  0x16   :  { %32 = dma.hbm_to_vmem [thread:$0]  %s258_s1, 256, %s27_s15, [#allocation6], %s220_s20, %s220_s20, %s221_s21  }
  0x17   :  { %212 = dma.done.wait [#allocation3], 128  }
  0x18   :  { %213 = vsyncadd [#allocation3], 4294967168 }
  0x19   :  { %214 = dma.done.wait [#allocation6], 256  }
  0x1a   :  { %215 = vsyncadd [#allocation6], 4294967040  ;;  %v222_v0 = vmov 0.0   ;;  %vm223_vm0 = vmmov 0   ;;  %v150_v1 = vld [vmem:[#allocation5 + $0x8] sm:$0xff]   ;;  %v151_v2 = vld [vmem:[#allocation5] sm:$0xff]  }
  0x1b   :  { %135 = vmatprep.subr.bf16.mxu0 %v222_v0  ;;  %139 = vmatprep.mubr.msk.bf16.mxu0 %vm223_vm0, %v222_v0  ;;  %v42_v3 = vld [vmem:[#allocation2] sm:$0xff]  ;;  %vm67_vm1 = vcmask 261120   ;;  %s224_s1 = smov [#allocation7]  }
  0x1c   :  { %136 = vmatpush3.bf16.msra.mxu0 %v150_v1  ;;  %v43_v4 = vpack.c.bf16 %v42_v3, %v42_v3  ;;  %v128_v5 = vld [vmem:[%s259_s2] ss:$0 sm:$0xff]  ;;  %s118_s25 = sshll.u32 %s224_s1, 4  ;;  %s119_s25 = int_to_ptr.vmem [resolvable:$true] %s118_s25 }
  0x1d   :  { %137 = vmatprep.subr.bf16.mxu0 %v222_v0  ;;  %s192_s26 = scalar_lea.vmem %s119_s25, 128  ;;  %p197_p11 = scmp.lt.s32.totalorder %s119_s25, %s119_s25 }
  0x1e   :  { %p193_p10 = scmp.ne.s32.totalorder %s119_s25, %s192_s26  ;;  %p198_p12 = scmp.lt.s32.totalorder %s192_s26, %s192_s26 }
  0x20   :  { %138 = vmatpush3.bf16.msra.mxu0 %v151_v2  ;;  %p199_p13 = por %p198_p12, %p197_p11 }
  0x22   :  { %p200_p0 = pnand %p199_p13, %p193_p10 }
  0x23   :  { %140 = vmatmul.mubr.msk.bf16.vlgmr.msra.gmra.mxu0 %vm67_vm1, %v43_v4 }
  0xe3   :  { %v105_v6 = vpop.f32.mrf.mxu0 }
  0xe4   :  { %v106_v7 = vadd.f32 %v128_v5, %v105_v6 }
  0xe5   :  { %v141_v8 = vpop.f32.mrf.mxu0 }
  0xe6   :  { %111 = vst [vmem:[#allocation7] sm:$0xff] %v106_v7 }
  0xe7   :  { %v108_v9 = vpop.f32.mrf.mxu0 }
  0xe8   :  { %203 = shalt.err (!%p200_p0)
}
  0xe9   :  { %121 = dma.vmem_to_hbm [thread:$0]  %s119_s25, 128, %s260_s3, [#allocation4]   ;;  %v142_v10 = vpop.f32.mrf.mxu0 }
  0xea   :  { %216 = dma.done.wait [#allocation4], 128  }
  0xeb   :  { %217 = vsyncadd [#allocation4], 4294967168 }
  0xec   :  { %125 = vsyncpa [#allocation3], 1 }
  0xed   :  { %126 = vsyncpa [#allocation6], 1 }
  0xee   :  { %127 = vsyncpa [#allocation4], 1 }

</bundles_post_ra>
